<compile_context>
chip_gen: v5e
topology: v5e:2x2
jax: 0.10.0
libtpu: 0.0.40
codegen_flags: <defaults>
</compile_context>

<pallas_src>
import jax
import jax.numpy as jnp
from jax.experimental import pallas as pl
from jax.experimental.pallas import tpu as pltpu


# ---------------------------------------------------------------------------
# Kernels
# ---------------------------------------------------------------------------
def _glu_fused_kernel(x_ref, o_ref):
    """x_ref: (tr, D) contiguous row block; o_ref: (tr, D/2).

    The a/b split is a static, 128-aligned lane slice of the already-resident
    VMEM block -> no cross-lane (XLU) movement.
    """
    half = o_ref.shape[-1]
    a = x_ref[:, :half].astype(jnp.float32)
    b = x_ref[:, half:].astype(jnp.float32)
    # sigmoid(b) == 0.5 * (tanh(0.5 * b) + 1): EUP transcendental, no divide.
    sig = 0.5 * (jnp.tanh(0.5 * b) + 1.0)
    o_ref[...] = (a * sig).astype(o_ref.dtype)


def _glu_split_kernel(a_ref, b_ref, o_ref):
    """a/b delivered as separate blocks (column-tiled or repacked paths)."""
    a = a_ref[...].astype(jnp.float32)
    b = b_ref[...].astype(jnp.float32)
    sig = 0.5 * (jnp.tanh(0.5 * b) + 1.0)
    o_ref[...] = (a * sig).astype(o_ref.dtype)


# ---------------------------------------------------------------------------
# Tiling / generation-aware parameters
# ---------------------------------------------------------------------------
def _gen_params():
    """(target_bytes per half-width input block, vmem_limit_bytes).

    v5e/v6e: ~2 MiB blocks already sit near the HBM roofline.
    v7x-class (64 MiB VMEM, ~3.2 TB/s per TC): ~4 MiB blocks amortize the
    ~0.35 us fixed per-step overhead better.
    Raising the scoped-VMEM limit to 32 MiB is free on every generation
    (physical VMEM is 128 MiB on v5e/v6e, 64 MiB on v7x) and removes the
    dependence on v5e's 16 MiB scoped default.
    """
    target = 2 * 1024 * 1024
    vmem_limit = 32 << 20
    try:
        info = pltpu.get_tpu_info()
        cap = getattr(info, "vmem_capacity_bytes", None)
        if cap is not None and cap <= (64 << 20):
            target = 4 * 1024 * 1024  # v7x-class TensorCore
    except Exception:
        pass  # conservative defaults are safe everywhere
    return target, vmem_limit


def _pick_tiles(rows, half, itemsize, target_bytes):
    """Pick (tile_rows, tile_cols, sublane_pack) for this elementwise kernel."""
    pack = max(8, 32 // max(1, itemsize))  # f32 -> 8, bf16 -> 16, int8 -> 32

    # Column tile: full half-width when modest; otherwise a 128-aligned divisor.
    tile_cols = half
    if half > 4096:
        for tc in (4096, 2048, 1024, 512, 256, 128):
            if half % tc == 0:
                tile_cols = tc
                break

    tr = target_bytes // max(1, tile_cols * itemsize)
    tr = max(pack, (tr // pack) * pack)

    # Megacore load balance: prefer >= 4 row programs (v7x has 2 TCs), else >= 2.
    if rows >= 4 * pack:
        tr = min(tr, max(pack, ((rows // 4) // pack) * pack))
    elif rows >= 2 * pack:
        tr = min(tr, max(pack, ((rows // 2) // pack) * pack))
    if tr >= rows:
        tr = rows
    return tr, tile_cols, pack


# ---------------------------------------------------------------------------
# Wrapper
# ---------------------------------------------------------------------------
def glu(x, *, tile_rows=None, tile_cols=None):
    assert x.shape[-1] % 2 == 0, "Input dimension must be even"
    d = int(x.shape[-1])
    half = d // 2
    lead = x.shape[:-1]
    rows = 1
    for s in lead:
        rows *= int(s)
    rows = max(rows, 1)

    itemsize = jnp.dtype(x.dtype).itemsize
    target_bytes, vmem_limit = _gen_params()
    x2 = x.reshape(rows, d)

    tr_auto, tc_auto, pack = _pick_tiles(rows, half, itemsize, target_bytes)
    tr = tr_auto if tile_rows is None else max(1, min(int(tile_rows), rows))
    tc = tc_auto if tile_cols is None else max(1, min(int(tile_cols), half))
    if not (half % tc == 0 and tc % 128 == 0):
        tc = tc_auto  # keep column tiles lane-aligned divisors of the half

    cost = pl.CostEstimate(
        flops=4 * rows * half,
        transcendentals=rows * half,
        bytes_accessed=3 * rows * half * itemsize,
    )
    aligned = (half % 128 == 0)

    if aligned and half == tc:
        # -------- Fast path: one contiguous (tr, D) read, in-kernel split ----
        grid = (pl.cdiv(rows, tr),)
        out2 = pl.pallas_call(
            _glu_fused_kernel,
            out_shape=jax.ShapeDtypeStruct((rows, half), x.dtype),
            grid_spec=pltpu.PrefetchScalarGridSpec(
                num_scalar_prefetch=0,
                grid=grid,
                in_specs=[pl.BlockSpec((tr, d), lambda i: (i, 0))],
                out_specs=pl.BlockSpec((tr, half), lambda i: (i, 0)),
            ),
            compiler_params=pltpu.CompilerParams(
                dimension_semantics=("parallel",),
                vmem_limit_bytes=vmem_limit,
            ),
            cost_estimate=cost,
        )(x2)

    elif aligned:
        # -------- Wide aligned halves: DMA-level split with a column offset --
        col_blocks = half // tc
        off = col_blocks
        grid = (pl.cdiv(rows, tr), col_blocks)
        out2 = pl.pallas_call(
            _glu_split_kernel,
            out_shape=jax.ShapeDtypeStruct((rows, half), x.dtype),
            grid_spec=pltpu.PrefetchScalarGridSpec(
                num_scalar_prefetch=0,
                grid=grid,
                in_specs=[
                    pl.BlockSpec((tr, tc), lambda i, j: (i, j)),
                    pl.BlockSpec((tr, tc), lambda i, j: (i, j + off)),
                ],
                out_specs=pl.BlockSpec((tr, tc), lambda i, j: (i, j)),
            ),
            compiler_params=pltpu.CompilerParams(
                dimension_semantics=("parallel", "parallel"),
                vmem_limit_bytes=vmem_limit,
            ),
            cost_estimate=cost,
        )(x2, x2)

    else:
        # -------- Unaligned half (tiny hidden sizes): XLA split + lane-dense --
        # The XLA slice materializes a copy anyway, so the flatten/pad/reshape
        # that follows is essentially free and buys unmasked full-lane stores.
        a_flat = x2[:, :half].reshape(-1)
        b_flat = x2[:, half:].reshape(-1)
        total = rows * half
        lane_tile = pack * 128
        padded = pl.cdiv(total, lane_tile) * lane_tile
        if padded != total:
            a_flat = jnp.pad(a_flat, (0, padded - total))
            b_flat = jnp.pad(b_flat, (0, padded - total))
        width = 128
        for w in (4096, 2048, 1024, 512, 256, 128):
            if padded % (pack * w) == 0:
                width = w
                break
        r2 = padded // width
        a2 = a_flat.reshape(r2, width)
        b2 = b_flat.reshape(r2, width)
        tr2, _, _ = _pick_tiles(r2, width, itemsize, target_bytes)
        grid = (pl.cdiv(r2, tr2),)
        out_flat = pl.pallas_call(
            _glu_split_kernel,
            out_shape=jax.ShapeDtypeStruct((r2, width), x.dtype),
            grid_spec=pltpu.PrefetchScalarGridSpec(
                num_scalar_prefetch=0,
                grid=grid,
                in_specs=[
                    pl.BlockSpec((tr2, width), lambda i: (i, 0)),
                    pl.BlockSpec((tr2, width), lambda i: (i, 0)),
                ],
                out_specs=pl.BlockSpec((tr2, width), lambda i: (i, 0)),
            ),
            compiler_params=pltpu.CompilerParams(
                dimension_semantics=("parallel",),
                vmem_limit_bytes=vmem_limit,
            ),
            cost_estimate=cost,
        )(a2, b2)
        out2 = out_flat.reshape(-1)[:total].reshape(rows, half)

    return out2.reshape(*lead, half)


# ---------------------------------------------------------------------------
# Self-test
# ---------------------------------------------------------------------------
if __name__ == "__main__":
    key = jax.random.PRNGKey(0)

    def _ref(x):
        h = x.shape[-1] // 2
        return x[..., :h] * jax.nn.sigmoid(x[..., h:])

    k1, k2, k3 = jax.random.split(key, 3)

    # Small shape consistent with the module (batch=2, seq=8, hidden=32):
    # exercises the unaligned-half lane-dense-repack path.
    x_small = jax.random.normal(k1, (2, 8, 32), dtype=jnp.float32)
    out_small = jax.block_until_ready(glu(x_small))
    assert out_small.shape == (2, 8, 16)
    assert jnp.allclose(out_small, _ref(x_small), atol=1e-6, rtol=1e-5)

    # 128-aligned hidden size: exercises the contiguous fused-read fast path.
    x_big = jax.random.normal(k2, (2, 8, 256), dtype=jnp.float32)
    out_big = jax.block_until_ready(glu(x_big))
    assert out_big.shape == (2, 8, 128)
    assert jnp.allclose(out_big, _ref(x_big), atol=1e-6, rtol=1e-5)

    # bf16 input: exercises the 16-row sublane-pack rounding on the fast path.
    x_bf16 = jax.random.normal(k3, (2, 8, 256), dtype=jnp.bfloat16)
    out_bf16 = jax.block_until_ready(glu(x_bf16))
    assert out_bf16.shape == (2, 8, 128)
    assert jnp.allclose(out_bf16.astype(jnp.float32),
                        _ref(x_bf16).astype(jnp.float32),
                        atol=2e-2, rtol=2e-2)

    print("KERNEL_OK")
</pallas_src>

<mosaic_0001>
module attributes {stable_mosaic.version = 11 : i64} {
  func.func @_glu_split_kernel(%arg0: i32, %arg1: memref<8x128xf32, #tpu.memory_space<vmem>>, %arg2: memref<8x128xf32, #tpu.memory_space<vmem>>, %arg3: memref<8x128xf32, #tpu.memory_space<vmem>>) attributes {dimension_semantics = [#tpu.dimension_semantics<parallel>], iteration_bounds = array<i64: 1>, scalar_prefetch = 0 : i64, scratch_operands = 0 : i64, tpu.core_type = #tpu.core_type<tc>, window_params = [{transform_indices = @transform_0, window_bounds = array<i64: 8, 128>}, {transform_indices = @transform_1, window_bounds = array<i64: 8, 128>}, {transform_indices = @transform_2, window_bounds = array<i64: 8, 128>}]} {
    %c0 = arith.constant 0 : index
    %c0_0 = arith.constant 0 : index
    %0 = vector.load %arg1[%c0, %c0_0] : memref<8x128xf32, #tpu.memory_space<vmem>>, vector<8x128xf32>
    %c0_1 = arith.constant 0 : index
    %c0_2 = arith.constant 0 : index
    %1 = vector.load %arg2[%c0_1, %c0_2] : memref<8x128xf32, #tpu.memory_space<vmem>>, vector<8x128xf32>
    %cst = arith.constant 5.000000e-01 : f32
    %2 = vector.broadcast %cst : f32 to vector<8x128xf32>
    %3 = arith.mulf %2, %1 : vector<8x128xf32>
    %4 = math.tanh %3 : vector<8x128xf32>
    %cst_3 = arith.constant 1.000000e+00 : f32
    %5 = vector.broadcast %cst_3 : f32 to vector<8x128xf32>
    %6 = arith.addf %4, %5 : vector<8x128xf32>
    %cst_4 = arith.constant 5.000000e-01 : f32
    %7 = vector.broadcast %cst_4 : f32 to vector<8x128xf32>
    %8 = arith.mulf %7, %6 : vector<8x128xf32>
    %9 = arith.mulf %0, %8 : vector<8x128xf32>
    %c0_5 = arith.constant 0 : index
    %c0_6 = arith.constant 0 : index
    %10 = vector.load %arg3[%c0_5, %c0_6] : memref<8x128xf32, #tpu.memory_space<vmem>>, vector<8x128xf32>
    tpu.vector_store %arg3[%c0_5, %c0_6], %9 {strides = array<i32>} : memref<8x128xf32, #tpu.memory_space<vmem>>, vector<8x128xf32>,
    return
  }
  func.func @transform_0(%arg0: i32) -> (i32, i32) {
    %c0_i32 = arith.constant 0 : i32
    %c0_i32_0 = arith.constant 0 : i32
    return %arg0, %c0_i32 : i32, i32
  }
  func.func @transform_1(%arg0: i32) -> (i32, i32) {
    %c0_i32 = arith.constant 0 : i32
    %c0_i32_0 = arith.constant 0 : i32
    return %arg0, %c0_i32 : i32, i32
  }
  func.func @transform_2(%arg0: i32) -> (i32, i32) {
    %c0_i32 = arith.constant 0 : i32
    %c0_i32_0 = arith.constant 0 : i32
    return %arg0, %c0_i32 : i32, i32
  }
}

</mosaic_0001>

<bundles_post_ra>
// kernel: tpu_custom_call.1
= control target key start
LH: loop header
LB: loop body
LE: loop exit
PB: predicated region body
PF: predicated region fallthrough
CT: control target
= control target key end

     0   :  { %7 = vsyncpa [#allocation3], 0  ;;  %s176_s0 = inlined_call_operand.hbm [shape: f32[8,128], index: 0, kind: input, shape index: {}]   ;;  %s177_s1 = inlined_call_operand.hbm [shape: f32[8,128], index: 1, kind: input, shape index: {}]   ;;  %s178_s2 = inlined_call_operand.hbm [shape: f32[8,128], index: 2, kind: output, shape index: {}]  }
   0x1   :  { %8 = vsyncpa [#allocation6], 0 }
   0x2   :  { %9 = vsyncpa [#allocation4], 0  ;;  %s15_s11 = sshll.u32 %s176_s0, 4  ;;  %s149_s12 = smov [#allocation2]   ;;  %s16_s11 = int_to_ptr.hbm [resolvable:$true] %s15_s11 }
   0x3   :  { %s17_s13 = sshll.u32 %s149_s12, 4  ;;  %s26_s16 = sshll.u32 %s177_s1, 4  ;;  %s18_s13 = int_to_ptr.vmem [resolvable:$true] %s17_s13  ;;  %s27_s16 = int_to_ptr.hbm [resolvable:$true] %s26_s16 }
   0x4   :  { %20 = dma.hbm_to_vmem [thread:$0]  %s16_s11, 128, %s18_s13, [#allocation3]  }
   0x5   :  { %s150_s17 = smov [#allocation5]  }
   0x6   :  { %s28_s18 = sshll.u32 %s150_s17, 4  ;;  %s29_s18 = int_to_ptr.vmem [resolvable:$true] %s28_s18 }
   0x7   :  { %31 = dma.hbm_to_vmem [thread:$0]  %s27_s16, 128, %s29_s18, [#allocation6]  }
   0x8   :  { %143 = dma.done.wait [#allocation3], 128  }
   0x9   :  { %144 = vsyncadd [#allocation3], 4294967168 }
   0xa   :  { %145 = dma.done.wait [#allocation6], 128  }
   0xb   :  { %146 = vsyncadd [#allocation6], 4294967168  ;;  %v41_v0 = vld [vmem:[#allocation5] sm:$0xff]  ;;  %v40_v4 = vld [vmem:[#allocation2] sm:$0xff]  ;;  %s151_s0 = smov [#allocation7]   ;;  %s55_s21 = sshll.u32 %s178_s2, 4  ;;  %s56_s21 = int_to_ptr.hbm [resolvable:$true] %s55_s21 }
   0xc   :  { %v42_v1 = vmul.f32 0.5, %v41_v0  ;;  %s53_s19 = sshll.u32 %s151_s0, 4  ;;  %s54_s19 = int_to_ptr.vmem [resolvable:$true] %s53_s19 }
   0xe   :  { %69 = vtanh.f32 %v42_v1 }
  0x14   :  { %v70_v2 = vpop.eup %69 }
  0x15   :  { %v44_v3 = vadd.f32 1.0, %v70_v2 }
  0x17   :  { %v45_v5 = vmul.f32 0.5, %v44_v3 }
  0x19   :  { %v46_v6 = vmul.f32 %v45_v5, %v40_v4 }
  0x1b   :  { %47 = vst [vmem:[#allocation7] sm:$0xff] %v46_v6 }
  0x1c   :  { %58 = dma.vmem_to_hbm [thread:$0]  %s54_s19, 128, %s56_s21, [#allocation4]  }
  0x1d   :  { %147 = dma.done.wait [#allocation4], 128  }
  0x1e   :  { %148 = vsyncadd [#allocation4], 4294967168 }
  0x1f   :  { %63 = vsyncpa [#allocation3], 1 }
  0x20   :  { %64 = vsyncpa [#allocation6], 1 }
  0x21   :  { %65 = vsyncpa [#allocation4], 1 }

</bundles_post_ra>
